<compile_context>
chip_gen: v5e
topology: v5e:2x2
jax: 0.10.0
libtpu: 0.0.40
codegen_flags: <defaults>
</compile_context>

<pallas_src>
import functools

import numpy as np
import jax
import jax.numpy as jnp
from jax import lax
from jax.experimental import pallas as pl
from jax.experimental.pallas import tpu as pltpu

# ---- OIMLoss hyperparameters (module __init__ args, kept small) ----
NUM_FEATURES = 32     # num_features
NUM_PIDS = 200        # num_pids
NUM_CQ = 56           # num_cq_size  (NUM_PIDS + NUM_CQ = 256 -> 2 C tiles)
OIM_MOMENTUM = 0.5    # oim_momentum (only used in the OIM.backward buffer update)
OIM_SCALAR = 30.0     # oim_scalar
LOSS_WEIGHT = 1.0     # loss_weight
IGNORE_INDEX = 5554   # hard-coded in the module (unlabeled identity)

_LANE = 128
TILE_N = 16           # bf16 native sublane pack; production: keep 16-128
TILE_C = 128          # production: 512-2048 (bf16 w tile double-buffered <= ~2 MB)


def _round_up(x, m):
    return ((x + m - 1) // m) * m


def _oim_ce_kernel(x_ref, w_ref, lab_ref, out_ref, m_ref, l_ref, t_ref, *,
                   c_valid, tile_c):
    j = pl.program_id(1)

    @pl.when(j == 0)
    def _():
        m_ref[...] = jnp.full_like(m_ref, -jnp.inf)
        l_ref[...] = jnp.zeros_like(l_ref)
        t_ref[...] = jnp.zeros_like(t_ref)

    # (tile_n, D_pad) bf16 @ (D_pad, tile_c) bf16 -> f32 on the MXU.
    # x is pre-scaled by oim_scalar on the host, so s is already the scaled logits.
    s = jnp.dot(x_ref[...], w_ref[...], preferred_element_type=jnp.float32)

    lab = lab_ref[...]                                               # (tile_n, 1) i32
    col = j * tile_c + lax.broadcasted_iota(jnp.int32, s.shape, 1)

    # Online softmax over the C axis. Padded class columns of w are all-zero, so
    # s == 0 there: the running max stays a valid upper bound, and the padded
    # columns are dropped by fusing the mask into the exp pass (no logits rewrite).
    m_prev = m_ref[...]
    m_new = jnp.maximum(m_prev, jnp.max(s, axis=-1, keepdims=True))
    p = jnp.where(col < c_valid, jnp.exp(s - m_new), 0.0)
    alpha = jnp.exp(m_prev - m_new)                                  # exp(-inf)=0 on step 0
    l_ref[...] = alpha * l_ref[...] + jnp.sum(p, axis=-1, keepdims=True)
    t_ref[...] = t_ref[...] + jnp.sum(jnp.where(col == lab, s, 0.0),
                                      axis=-1, keepdims=True)
    m_ref[...] = m_new

    @pl.when(j == pl.num_programs(1) - 1)
    def _():
        # F.cross_entropy per row: lse - logit[label]; ignore_index rows (incl. the
        # N padding rows) contribute exact 0.
        # NOTE: labels outside [0, c_valid) (other than IGNORE_INDEX) yield tgt=0
        # here instead of raising like torch.F.cross_entropy.
        valid = lab != IGNORE_INDEX
        lse = m_ref[...] + jnp.log(l_ref[...])
        per_row = jnp.where(valid, lse - t_ref[...], 0.0)            # (tile_n, 1) f32
        out_ref[...] = jnp.broadcast_to(per_row, out_ref.shape)      # lane-dense store


def prepare_class_buffer(lut, cq, tile_c=TILE_C):
    """One-time prep of the persistent OIM class memory for the kernel.

    concat([lut, cq], 0) -> pad (C, D) to tile-aligned (C_pad, D_pad) -> transpose
    to (D_pad, C_pad) -> bf16 (MXU feed).  In a training loop this buffer is
    persistent (updated in OIM.backward), NOT rebuilt per forward call.
    Returns (w_dc_bf16, c_valid).
    """
    w = jnp.concatenate([lut, cq], axis=0).astype(jnp.float32)       # (C, D)
    c, d = w.shape
    c_pad = _round_up(c, tile_c)
    d_pad = _round_up(d, _LANE)
    w = jnp.pad(w, ((0, c_pad - c), (0, d_pad - d)))
    return jnp.transpose(w).astype(jnp.bfloat16), c                  # (D_pad, C_pad)


def oim_loss_pallas(inputs_f, label_f, w_dc, c_valid, *, tile_n=TILE_N, tile_c=TILE_C):
    """inputs_f: (N, D) filtered features; label_f: (N,) int labels (5554 = ignore);
    w_dc: (D_pad, C_pad) bf16 pre-transposed class buffer; c_valid: real class count."""
    n, d = inputs_f.shape
    d_pad, c_pad = w_dc.shape
    assert c_pad % tile_c == 0
    n_pad = _round_up(max(n, 1), tile_n)

    # Single fused pad per operand (no zeros + dynamic-update-slice HLOs).
    # oim_scalar is folded into x here; x is cast to bf16 for the MXU feed.
    x = jnp.pad((inputs_f * OIM_SCALAR).astype(jnp.bfloat16),
                ((0, n_pad - n), (0, d_pad - d)))
    lab = jnp.pad(label_f.astype(jnp.int32), (0, n_pad - n),
                  constant_values=IGNORE_INDEX).reshape(n_pad, 1)

    grid = (n_pad // tile_n, c_pad // tile_c)
    kernel = functools.partial(_oim_ce_kernel, c_valid=c_valid, tile_c=tile_c)
    per_row = pl.pallas_call(
        kernel,
        out_shape=jax.ShapeDtypeStruct((n_pad, _LANE), jnp.float32),
        grid_spec=pltpu.PrefetchScalarGridSpec(
            num_scalar_prefetch=0,
            grid=grid,
            in_specs=[
                pl.BlockSpec((tile_n, d_pad), lambda i, j: (i, 0)),   # x   (bf16)
                pl.BlockSpec((d_pad, tile_c), lambda i, j: (0, j)),   # w   (bf16)
                pl.BlockSpec((tile_n, 1), lambda i, j: (i, 0)),       # lab (i32)
            ],
            out_specs=pl.BlockSpec((tile_n, _LANE), lambda i, j: (i, 0)),
            scratch_shapes=[pltpu.VMEM((tile_n, 1), jnp.float32)] * 3,  # m, l, tgt
        ),
        compiler_params=pltpu.CompilerParams(
            dimension_semantics=("parallel", "arbitrary")),
    )(x, w_dc, lab)

    # Tiny (~N element) epilogue in plain JAX: mean over valid rows.  Rows with
    # ignore_index / padding are exact 0 in per_row; the clamped denominator
    # reproduces the module's "(label == 5554).all()" -> 0 branch with no inf/nan.
    total = jnp.sum(per_row[:, 0])
    n_valid = jnp.sum((lab[:, 0] != IGNORE_INDEX).astype(jnp.float32))
    mean_ce = total / jnp.maximum(n_valid, 1.0)
    # Module semantics: loss_oim = CE * loss_weight; return loss_oim * loss_weight
    # (loss_weight intentionally applied twice, matching the reference module).
    return mean_ce * (LOSS_WEIGHT * LOSS_WEIGHT)


if __name__ == "__main__":
    key = jax.random.PRNGKey(0)
    k0, k1, k2, k3 = jax.random.split(key, 4)

    N_ROI = 40
    # roi_label semantics: 0 = background (filtered out), 1..NUM_PIDS = labeled pid,
    # 5555 = unlabeled identity (-> label 5554, ignored by the CE loss).
    raw = np.asarray(jax.random.randint(k0, (N_ROI,), 0, NUM_PIDS + 3))
    roi_label = np.where(raw > NUM_PIDS, 5555, raw).astype(np.int64)
    roi_label[0], roi_label[1], roi_label[2] = 1, 5555, 0   # guarantee path coverage

    inputs = jax.random.normal(k1, (N_ROI, NUM_FEATURES), dtype=jnp.float32)
    inputs = inputs / jnp.linalg.norm(inputs, axis=1, keepdims=True)

    # Module registers zero buffers; use deterministic L2-normalized random rows so
    # the matmul / softmax path is non-degenerate.
    lut = jax.random.normal(k2, (NUM_PIDS, NUM_FEATURES), dtype=jnp.float32)
    lut = lut / jnp.linalg.norm(lut, axis=1, keepdims=True)
    cq = jax.random.normal(k3, (NUM_CQ, NUM_FEATURES), dtype=jnp.float32)
    cq = cq / jnp.linalg.norm(cq, axis=1, keepdims=True)

    # --- glue: data-dependent boolean-mask row selection (dynamic shape) host-side ---
    label = roi_label - 1
    inds = label >= 0
    label_f = jnp.asarray(label[inds], dtype=jnp.int32)
    inputs_f = jnp.asarray(np.asarray(inputs)[inds])

    # Persistent class buffer (bf16, pre-transposed), prepared ONCE (not per call).
    w_dc, c_valid = prepare_class_buffer(lut, cq)

    loss = oim_loss_pallas(inputs_f, label_f, w_dc, c_valid)
    loss = jax.block_until_ready(loss)

    # header_cq bookkeeping (python-side state update, as in the module forward)
    header_cq = int((np.asarray(label_f) >= NUM_PIDS).sum()) % NUM_CQ
    # TODO(synk): lut/cq momentum update + circular-queue write happen in OIM.backward
    # (a stateful side effect), not in the forward pass; not part of this kernel.
    # TODO(synk): the all_gather_object cross-device gather in OIM.forward only feeds
    # the saved-for-backward state; single-device script skips it.

    # Reference check (plain JAX) using the same bf16-rounded operands / f32 math
    # the kernel sees, so the tolerance stays tight.
    x_ref = (inputs_f * OIM_SCALAR).astype(jnp.bfloat16).astype(jnp.float32)
    w_ref = jnp.concatenate([lut, cq], axis=0).astype(jnp.bfloat16).astype(jnp.float32)
    logits_ref = x_ref @ w_ref.T
    lab_np = np.asarray(label_f)
    valid = lab_np != IGNORE_INDEX
    logp = jax.nn.log_softmax(logits_ref, axis=-1)
    ref_per = -logp[np.arange(logits_ref.shape[0])[valid], lab_np[valid]]
    ref = float(jnp.mean(ref_per)) * LOSS_WEIGHT * LOSS_WEIGHT
    assert abs(float(loss) - ref) < 1e-3 + 1e-3 * abs(ref), (float(loss), ref)

    print("KERNEL_OK")
</pallas_src>

<mosaic_0001>
module attributes {stable_mosaic.version = 11 : i64} {
  func.func @_oim_ce_kernel(%arg0: i32, %arg1: i32, %arg2: memref<16x128xbf16, #tpu.memory_space<vmem>>, %arg3: memref<128x128xbf16, #tpu.memory_space<vmem>>, %arg4: memref<16x1xi32, #tpu.memory_space<vmem>>, %arg5: memref<16x128xf32, #tpu.memory_space<vmem>>, %arg6: memref<16x1xf32, #tpu.memory_space<vmem>>, %arg7: memref<16x1xf32, #tpu.memory_space<vmem>>, %arg8: memref<16x1xf32, #tpu.memory_space<vmem>>) attributes {dimension_semantics = [#tpu.dimension_semantics<parallel>, #tpu.dimension_semantics<arbitrary>], iteration_bounds = array<i64: 3, 2>, scalar_prefetch = 0 : i64, scratch_operands = 3 : i64, tpu.core_type = #tpu.core_type<tc>, window_params = [{transform_indices = @transform_0, window_bounds = array<i64: 16, 128>}, {transform_indices = @transform_1, window_bounds = array<i64: 128, 128>}, {transform_indices = @transform_2, window_bounds = array<i64: 16, 1>}, {transform_indices = @transform_3, window_bounds = array<i64: 16, 128>}]} {
    %c0_i32 = arith.constant 0 : i32
    %0 = arith.cmpi eq, %arg1, %c0_i32 : i32
    %1 = arith.extui %0 : i1 to i32
    %c0_i32_0 = arith.constant 0 : i32
    %2 = arith.cmpi ne, %1, %c0_i32_0 : i32
    scf.if %2 {
      %cst_24 = arith.constant 0xFF800000 : f32
      %43 = vector.broadcast %cst_24 : f32 to vector<16x1xf32>
      %c0_25 = arith.constant 0 : index
      %c0_26 = arith.constant 0 : index
      %44 = vector.load %arg6[%c0_25, %c0_26] : memref<16x1xf32, #tpu.memory_space<vmem>>, vector<16x1xf32>
      tpu.vector_store %arg6[%c0_25, %c0_26], %43 {strides = array<i32>} : memref<16x1xf32, #tpu.memory_space<vmem>>, vector<16x1xf32>,
      %cst_27 = arith.constant 0.000000e+00 : f32
      %45 = vector.broadcast %cst_27 : f32 to vector<16x1xf32>
      %c0_28 = arith.constant 0 : index
      %c0_29 = arith.constant 0 : index
      %46 = vector.load %arg7[%c0_28, %c0_29] : memref<16x1xf32, #tpu.memory_space<vmem>>, vector<16x1xf32>
      tpu.vector_store %arg7[%c0_28, %c0_29], %45 {strides = array<i32>} : memref<16x1xf32, #tpu.memory_space<vmem>>, vector<16x1xf32>,
      %cst_30 = arith.constant 0.000000e+00 : f32
      %47 = vector.broadcast %cst_30 : f32 to vector<16x1xf32>
      %c0_31 = arith.constant 0 : index
      %c0_32 = arith.constant 0 : index
      %48 = vector.load %arg8[%c0_31, %c0_32] : memref<16x1xf32, #tpu.memory_space<vmem>>, vector<16x1xf32>
      tpu.vector_store %arg8[%c0_31, %c0_32], %47 {strides = array<i32>} : memref<16x1xf32, #tpu.memory_space<vmem>>, vector<16x1xf32>,
    } else {
    }
    %c0 = arith.constant 0 : index
    %c0_1 = arith.constant 0 : index
    %3 = vector.load %arg2[%c0, %c0_1] : memref<16x128xbf16, #tpu.memory_space<vmem>>, vector<16x128xbf16>
    %c0_2 = arith.constant 0 : index
    %c0_3 = arith.constant 0 : index
    %4 = vector.load %arg3[%c0_2, %c0_3] : memref<128x128xbf16, #tpu.memory_space<vmem>>, vector<128x128xbf16>
    %cst = arith.constant dense<0.000000e+00> : vector<16x128xf32>
    %5 = tpu.matmul %3, %4, %cst {dimension_numbers = #tpu.dot_dimension_numbers<[1], [0], [0], [1], [0, 0, 1, 1], [], []>} : vector<16x128xbf16>, vector<128x128xbf16>, vector<16x128xf32> -> vector<16x128xf32>
    %c0_4 = arith.constant 0 : index
    %c0_5 = arith.constant 0 : index
    %6 = vector.load %arg4[%c0_4, %c0_5] : memref<16x1xi32, #tpu.memory_space<vmem>>, vector<16x1xi32>
    %c128_i32 = arith.constant 128 : i32
    %7 = arith.muli %arg1, %c128_i32 : i32
    %8 = tpu.iota {dimensions = array<i32: 1>} : vector<16x128xi32>
    %9 = vector.broadcast %7 : i32 to vector<16x128xi32>
    %10 = arith.addi %9, %8 : vector<16x128xi32>
    %c0_6 = arith.constant 0 : index
    %c0_7 = arith.constant 0 : index
    %11 = vector.load %arg6[%c0_6, %c0_7] : memref<16x1xf32, #tpu.memory_space<vmem>>, vector<16x1xf32>
    %cst_8 = arith.constant dense<0xFF800000> : vector<16xf32>
    %12 = vector.multi_reduction <maximumf>, %5, %cst_8 [1] : vector<16x128xf32> to vector<16xf32>
    %13 = vector.shape_cast %12 : vector<16xf32> to vector<16x1xf32>
    %14 = arith.maximumf %11, %13 : vector<16x1xf32>
    %c256_i32 = arith.constant 256 : i32
    %15 = vector.broadcast %c256_i32 : i32 to vector<16x128xi32>
    %16 = arith.cmpi slt, %10, %15 : vector<16x128xi32>
    %17 = vector.broadcast %14 : vector<16x1xf32> to vector<16x128xf32>
    %18 = arith.subf %5, %17 : vector<16x128xf32>
    %19 = math.exp %18 : vector<16x128xf32>
    %cst_9 = arith.constant 0.000000e+00 : f32
    %20 = vector.broadcast %cst_9 : f32 to vector<16x128xf32>
    %21 = arith.select %16, %19, %20 : vector<16x128xi1>, vector<16x128xf32>
    %22 = arith.subf %11, %14 : vector<16x1xf32>
    %23 = math.exp %22 : vector<16x1xf32>
    %c0_10 = arith.constant 0 : index
    %c0_11 = arith.constant 0 : index
    %24 = vector.load %arg7[%c0_10, %c0_11] : memref<16x1xf32, #tpu.memory_space<vmem>>, vector<16x1xf32>
    %25 = arith.mulf %23, %24 : vector<16x1xf32>
    %cst_12 = arith.constant dense<0.000000e+00> : vector<16xf32>
    %26 = vector.multi_reduction <add>, %21, %cst_12 [1] : vector<16x128xf32> to vector<16xf32>
    %27 = vector.shape_cast %26 : vector<16xf32> to vector<16x1xf32>
    %28 = arith.addf %25, %27 : vector<16x1xf32>
    %c0_13 = arith.constant 0 : index
    %c0_14 = arith.constant 0 : index
    %29 = vector.load %arg7[%c0_13, %c0_14] : memref<16x1xf32, #tpu.memory_space<vmem>>, vector<16x1xf32>
    tpu.vector_store %arg7[%c0_13, %c0_14], %28 {strides = array<i32>} : memref<16x1xf32, #tpu.memory_space<vmem>>, vector<16x1xf32>,
    %c0_15 = arith.constant 0 : index
    %c0_16 = arith.constant 0 : index
    %30 = vector.load %arg8[%c0_15, %c0_16] : memref<16x1xf32, #tpu.memory_space<vmem>>, vector<16x1xf32>
    %31 = vector.broadcast %6 : vector<16x1xi32> to vector<16x128xi32>
    %32 = arith.cmpi eq, %10, %31 : vector<16x128xi32>
    %cst_17 = arith.constant 0.000000e+00 : f32
    %33 = vector.broadcast %cst_17 : f32 to vector<16x128xf32>
    %34 = arith.select %32, %5, %33 : vector<16x128xi1>, vector<16x128xf32>
    %cst_18 = arith.constant dense<0.000000e+00> : vector<16xf32>
    %35 = vector.multi_reduction <add>, %34, %cst_18 [1] : vector<16x128xf32> to vector<16xf32>
    %36 = vector.shape_cast %35 : vector<16xf32> to vector<16x1xf32>
    %37 = arith.addf %30, %36 : vector<16x1xf32>
    %c0_19 = arith.constant 0 : index
    %c0_20 = arith.constant 0 : index
    %38 = vector.load %arg8[%c0_19, %c0_20] : memref<16x1xf32, #tpu.memory_space<vmem>>, vector<16x1xf32>
    tpu.vector_store %arg8[%c0_19, %c0_20], %37 {strides = array<i32>} : memref<16x1xf32, #tpu.memory_space<vmem>>, vector<16x1xf32>,
    %c0_21 = arith.constant 0 : index
    %c0_22 = arith.constant 0 : index
    %39 = vector.load %arg6[%c0_21, %c0_22] : memref<16x1xf32, #tpu.memory_space<vmem>>, vector<16x1xf32>
    tpu.vector_store %arg6[%c0_21, %c0_22], %14 {strides = array<i32>} : memref<16x1xf32, #tpu.memory_space<vmem>>, vector<16x1xf32>,
    %c1_i32 = arith.constant 1 : i32
    %40 = arith.cmpi eq, %arg1, %c1_i32 : i32
    %41 = arith.extui %40 : i1 to i32
    %c0_i32_23 = arith.constant 0 : i32
    %42 = arith.cmpi ne, %41, %c0_i32_23 : i32
    scf.if %42 {
      %c5554_i32 = arith.constant 5554 : i32
      %43 = vector.broadcast %c5554_i32 : i32 to vector<16x1xi32>
      %44 = arith.cmpi ne, %6, %43 : vector<16x1xi32>
      %c0_24 = arith.constant 0 : index
      %c0_25 = arith.constant 0 : index
      %45 = vector.load %arg6[%c0_24, %c0_25] : memref<16x1xf32, #tpu.memory_space<vmem>>, vector<16x1xf32>
      %c0_26 = arith.constant 0 : index
      %c0_27 = arith.constant 0 : index
      %46 = vector.load %arg7[%c0_26, %c0_27] : memref<16x1xf32, #tpu.memory_space<vmem>>, vector<16x1xf32>
      %47 = math.log %46 : vector<16x1xf32>
      %48 = arith.addf %45, %47 : vector<16x1xf32>
      %c0_28 = arith.constant 0 : index
      %c0_29 = arith.constant 0 : index
      %49 = vector.load %arg8[%c0_28, %c0_29] : memref<16x1xf32, #tpu.memory_space<vmem>>, vector<16x1xf32>
      %50 = arith.subf %48, %49 : vector<16x1xf32>
      %cst_30 = arith.constant 0.000000e+00 : f32
      %51 = vector.broadcast %cst_30 : f32 to vector<16x1xf32>
      %52 = arith.select %44, %50, %51 : vector<16x1xi1>, vector<16x1xf32>
      %53 = vector.shape_cast %52 : vector<16x1xf32> to vector<16x1xf32>
      %54 = vector.broadcast %53 : vector<16x1xf32> to vector<16x128xf32>
      %c0_31 = arith.constant 0 : index
      %c0_32 = arith.constant 0 : index
      %55 = vector.load %arg5[%c0_31, %c0_32] : memref<16x128xf32, #tpu.memory_space<vmem>>, vector<16x128xf32>
      tpu.vector_store %arg5[%c0_31, %c0_32], %54 {strides = array<i32>} : memref<16x128xf32, #tpu.memory_space<vmem>>, vector<16x128xf32>,
    } else {
    }
    return
  }
  func.func @transform_0(%arg0: i32, %arg1: i32) -> (i32, i32) {
    %c0_i32 = arith.constant 0 : i32
    %c0_i32_0 = arith.constant 0 : i32
    return %arg0, %c0_i32 : i32, i32
  }
  func.func @transform_1(%arg0: i32, %arg1: i32) -> (i32, i32) {
    %c0_i32 = arith.constant 0 : i32
    %c0_i32_0 = arith.constant 0 : i32
    return %c0_i32, %arg1 : i32, i32
  }
  func.func @transform_2(%arg0: i32, %arg1: i32) -> (i32, i32) {
    %c0_i32 = arith.constant 0 : i32
    %c0_i32_0 = arith.constant 0 : i32
    return %arg0, %c0_i32 : i32, i32
  }
  func.func @transform_3(%arg0: i32, %arg1: i32) -> (i32, i32) {
    %c0_i32 = arith.constant 0 : i32
    %c0_i32_0 = arith.constant 0 : i32
    return %arg0, %c0_i32 : i32, i32
  }
}

</mosaic_0001>

<bundles_post_ra>
// kernel: tpu_custom_call.1
= control target key start
LH: loop header
LB: loop body
LE: loop exit
PB: predicated region body
PF: predicated region fallthrough
CT: control target
= control target key end

     0   :  { %8 = vsyncpa [#allocation6], 0  ;;  %s1165_s0 = inlined_call_operand.vmem [shape: bf16[48,128], index: 0, kind: input, shape index: {}]   ;;  %s1166_s1 = inlined_call_operand.hbm [shape: bf16[128,256], index: 1, kind: input, shape index: {}]   ;;  %s1167_s2 = inlined_call_operand.vmem [shape: s32[48,1], index: 2, kind: input, shape index: {}]   ;;  %s1168_s3 = inlined_call_operand.hbm [shape: f32[48,128], index: 3, kind: output, shape index: {}]  }
   0x1   :  { %10 = vsyncpa [#allocation6 + $0x1], 0 }
   0x2   :  { %11 = vsyncpa [#allocation7], 0 }
   0x3   :  { %13 = vsyncpa [#allocation7 + $0x1], 0  ;;  %s954_s12 = smov 0   ;;  %s956_s13 = smov 0  }
   0x4   :  { %s958_s14 = smov 0   ;;  %s960_s15 = smov 0  }
   0x5   :  { %s962_s16 = smov 0   ;;  %s964_s17 = smov 0  }
   0x6   :  { %s966_s18 = smov 0   ;;  %s968_s19 = smov 0  }
   0x7   :  { %s970_s20 = smov 0   ;;  %s972_s21 = smov 0  }
   0x8   :  { %s974_s22 = smov 0  }
   0x9 LB: > { %1172 = sst [smem:[#allocation11_spill]] %s919_s21  ;;  %s577_s23 = sadd.s32 4294967295, %s923_s22   ;;  %s923_s22 = sphi %s974_s22, %s19_s22   ;;  %s919_s21 = sphi %s972_s21, %s1183_s21   ;;  %s915_s20 = sphi %s970_s20, %s1191_s20   ;;  %s911_s19 = sphi %s968_s19, %s1181_s19   ;;  %s907_s18 = sphi %s966_s18, %s1190_s18   ;;  %s903_s17 = sphi %s964_s17, %s1189_s17   ;;  %s899_s16 = sphi %s962_s16, %s1188_s16   ;;  %s895_s15 = sphi %s960_s15, %s1187_s15   ;;  %s891_s14 = sphi %s958_s14, %s1186_s14   ;;  %s887_s13 = sphi %s956_s13, %s1185_s13   ;;  %s883_s12 = sphi %s954_s12, %s1184_s12  }
   0xa   : > { %s578_s24 = sadd.s32 4294967294, %s923_s22   ;;  %s28_s25 = sadd.s32 1, %s915_s20 }
   0xb   : > { %s31_s26 = sadd.s32 1, %s919_s21  ;;  %p29_p0 = scmp.ge.s32.totalorder %s28_s25, 2 }
   0xc   : > { %s64_s27 = sadd.s32 1, %s903_s17  ;;  %p71_p1 = scmp.ne.s32.totalorder %s903_s17, %s899_s16 }
   0xd   : > { %p72_p2 = scmp.eq.s32.totalorder %s923_s22, 0  ;;  %s1193_s25 = smov (%p29_p0, %s28_s25), 0 }
   0xe   : > { %1173 = sst [smem:[#allocation12_spill]] %s1193_s25  ;;  %s1195_s26 = smov (!%p29_p0, %s31_s26), %s919_s21 }
   0xf   : > { %s61_s28 = ssub.s32 %s915_s20, %s1193_s25  ;;  %p1020_p3 = por %p72_p2, %p71_p1 }
  0x10   : > { %p33_p4 = scmp.ge.s32.totalorder %s1195_s26, 3  ;;  %p62_p5 = scmp.eq.s32.totalorder %s61_s28, 0 }
  0x11   : > { %p77_p6 = scmp.ne.s32.totalorder %s899_s16, %s895_s15  ;;  %p78_p7 = scmp.eq.s32.totalorder %s577_s23, 0 }
  0x12   : > { %s1197_s26 = smov (%p33_p4, %s1195_s26), 0  ;;  %s116_s6 = sadd.s32 1, %s891_s14 }
  0x13   : > { %1175 = sst [smem:[#allocation13_spill]] %s1197_s26  ;;  %p1030_p8 = por %p78_p7, %p77_p6 }
  0x14   : > { %s1028_s30 = scalar_select %p62_p5, %s903_s17, %s64_s27  }
  0x15   : > { %s113_s5 = ssub.s32 %s919_s21, %s1197_s26  ;;  %p126_p10 = scmp.ne.s32.totalorder %s891_s14, %s887_s13 }
  0x16   : > { %1176 = sst [smem:[#allocation14_spill]] %s1028_s30  ;;  %p114_p9 = scmp.eq.s32.totalorder %s113_s5, 0 }
  0x17   : > { %p127_p11 = scmp.eq.s32.totalorder %s577_s23, 5  ;;  %p132_p13 = scmp.ne.s32.totalorder %s887_s13, %s883_s12 }
  0x18   : > { %s1040_s7 = scalar_select %p114_p9, %s891_s14, %s116_s6  }
  0x19   : > { %p1042_p12 = por %p127_p11, %p126_p10  ;;  %p133_p0 = scmp.eq.s32.totalorder %s578_s24, 5 }
  0x1a   : > { %p656_p1 = scmp.lt.s32.totalorder %s923_s22, 6  ;;  %s162_s9 = sand.u32 1, %s903_s17  }
  0x1b   : > { %p1050_p2 = por %p133_p0, %p132_p13  ;;  %s581_s11 = sshll.u32 %s162_s9, 6 }
  0x1c   : > { %s582_s15 = sshll.u32 %s915_s20, 2  ;;  %s166_s6 = scalar_lea.vmem [#allocation5], %s581_s11 }
  0x1d   : > { %s170_s28 = scalar_lea.hbm %s1166_s1, %s582_s15  ;;  %s173_s26 = sshll.u32 %s166_s6, 4  ;;  %s174_s26 = int_to_ptr.vmem [resolvable:$true] %s173_s26 }
  0x1e   : > { %s171_s5 = sshll.u32 %s170_s28, 4  ;;  %p649_p4 = pnand %p656_p1, %p1020_p3  ;;  %s172_s5 = int_to_ptr.hbm [resolvable:$true] %s171_s5 }
  0x1f   : > { %p583_p5 = scmp.ge.s32.totalorder %s923_s22, 1  ;;  %s163_s24 = scalar_lea.sflag [#allocation6], %s162_s9 }
  0x20   : > { %s925_s25 = smov 128   ;;  %s926_s21 = smov 64  }
  0x21   : > { %s927_s30 = smov 4   ;;  %p190_p6 = scmp.lt.s32.totalorder %s923_s22, 7 }
  0x22   : > { %651 = dma.hbm_to_vmem [thread:$0]  (!%p649_p4), %s172_s5, 1024, %s174_s26, %s163_s24, %s925_s25, %s926_s21, %s927_s30  }
  0x23   : > { %p191_p7 = pnand %p583_p5, %p190_p6 }
  0x24   : > { %s196_s23 = sand.u32 (!%p191_p7), 1, %s899_s16  }
  0x25   : > { %194 = sbr.rel (%p191_p7) target bundleno = 747 (0x2eb), region = 32  ;;  %s584_s15 = sshll.u32 (!%p191_p7), %s196_s23, 6 }
  0x26   : > { %s197_s27 = scalar_lea.sflag (!%p191_p7), [#allocation6], %s196_s23  ;;  %s1063_s11 = scalar_lea.vmem (!%p191_p7), [#allocation5], %s584_s15 }
  0x2a   : > { %874 = dma.done.wait (%p1030_p8), %s197_s27, 1024  }
  0x2b   : > { %876 = vsyncadd (%p1030_p8), %s197_s27, 4294966272  ;;  %s231_s29 = sand.u32 1, %s887_s13   ;;  %s586_s21 = sshll.u32 %s911_s19, 1 }
  0x2c   : > { %s585_s25 = sshll.u32 %s231_s29, 4  ;;  %p235_p3 = scmp.lt.s32.totalorder %s586_s21, 5 }
  0x2d   : > { %s1081_s23 = scalar_lea.vmem [#allocation8], %s585_s25  ;;  %p590_p8 = scmp.ne.s32.totalorder %s907_s18, 0 }
  0x2e   : > { %s1199_s21 = smov (!%p235_p3, %s586_s21), 5 }
  0x2f   : > { %s587_s26 = sshll.u32 %s1199_s21, 2  ;;  %s589_s30 = sshll.u32 %s1199_s21, 3 }
  0x30   : > { %s1076_s5 = scalar_lea.vmem %s1165_s0, %s587_s26  ;;  %s244_s4 = scalar_lea.vmem %s1167_s2, %s589_s30 }
  0x31   : > { %250 = sbr.rel (%p590_p8) target bundleno = 61 (0x3d), region = 40 }
  0x36   : > { %vm251_vm0 = vcmask 7168   ;;  %v928_v0 = vmov -inf   ;;  %v929_v1 = vmov 0.0  }
  0x37   : > { %252 = vst.msk [vmem:[#allocation2] sm:$0xff] %vm251_vm0, %v928_v0 }
  0x38   : > { %253 = vst.msk [vmem:[#allocation2 + $0x8] sm:$0xff] %vm251_vm0, %v928_v0 }
  0x39   : > { %254 = vst.msk [vmem:[#allocation3] sm:$0xff] %vm251_vm0, %v929_v1 }
  0x3a   : > { %255 = vst.msk [vmem:[#allocation3 + $0x8] sm:$0xff] %vm251_vm0, %v929_v1 }
  0x3b   : > { %256 = vst.msk [vmem:[#allocation4] sm:$0xff] %vm251_vm0, %v929_v1 }
  0x3c   : > { %257 = vst.msk [vmem:[#allocation4 + $0x8] sm:$0xff] %vm251_vm0, %v929_v1 }
  0x3d PF: > { %v642_v2 = vld [vmem:[%s1063_s11 + $0x38] sm:$0xff]  ;;  %v641_v3 = vld [vmem:[%s1063_s11 + $0x30] sm:$0xff]  ;;  %v930_v4 = vmov 0   ;;  %v640_v6 = vld [vmem:[%s1063_s11 + $0x28] sm:$0xff]  ;;  %v347_v14 = vlaneseq  ;;  %s627_s15 = sshll.u32 %s907_s18, 7  ;;  %vm394_vm2 = vcmask 7168  }
  0x3e   : > { %330 = vmatpush.bf16.msra.mxu0 %v642_v2  ;;  %756 = vset.pattern.permute.xlu2 %v930_v4  ;;  %v1086_v5 = vld [vmem:[%s244_s4] sm:$0xff]  ;;  %v1090_v7 = vld [vmem:[%s244_s4 + $0x8] sm:$0xff]  ;;  %v639_v8 = vld [vmem:[%s1063_s11 + $0x20] sm:$0xff]  ;;  %v349_v16 = vstv %s627_s15  ;;  %p628_p9 = scmp.ne.s32.totalorder %s907_s18, 1 }
  0x3f   : > { %755 = vset.pattern.permute.xlu1 %v930_v4  ;;  %757 = vset.pattern.permute.xlu0 %v930_v4  ;;  %v638_v9 = vld [vmem:[%s1063_s11 + $0x18] sm:$0xff]  ;;  %v637_v10 = vld [vmem:[%s1063_s11 + $0x10] sm:$0xff]  ;;  %v636_v11 = vld [vmem:[%s1063_s11 + $0x8] sm:$0xff]  ;;  %v348_v15 = vand.u32 127, %v347_v14 }
  0x40   : > { %400 = vperm.xlu2 %756, %v1086_v5   ;;  %v635_v12 = vld [vmem:[%s1063_s11] sm:$0xff]  ;;  %v634_v13 = vld [vmem:[%s1076_s5] sm:$0xff]  ;;  %v352_v30 = vld [vmem:[#allocation2 + $0x8] sm:$0xff] }
  0x41   : > { %v350_v17 = vadd.s32 %v349_v16, %v348_v15  ;;  %v351_v23 = vld [vmem:[#allocation2] sm:$0xff]  ;;  %v384_v48 = vld [vmem:[#allocation3] sm:$0xff]  ;;  %v385_v53 = vld [vmem:[#allocation3 + $0x8] sm:$0xff] }
  0x42   : > { %331 = vmatpush.bf16.msra.mxu0 %v641_v3  ;;  %v397_v24 = vld [vmem:[#allocation4] sm:$0xff] }
  0x43   : > { %vm359_vm3 = vcmp.lt.s32.totalorder %v350_v17, 256  ;;  %v398_v54 = vld [vmem:[#allocation4 + $0x8] sm:$0xff] }
  0x46   : > { %332 = vmatpush.bf16.msra.mxu0 %v640_v6 }
  0x48   : > { %403 = vperm.xlu2 %756, %v1090_v7  }
  0x4a   : > { %333 = vmatpush.bf16.msra.mxu0 %v639_v8 }
  0x4e   : > { %334 = vmatpush.bf16.msra.mxu0 %v638_v9 }
  0x52   : > { %335 = vmatpush.bf16.msra.mxu0 %v637_v10 }
  0x56   : > { %336 = vmatpush.bf16.msra.mxu0 %v636_v11 }
  0x5a   : > { %337 = vmatpush.bf16.msra.mxu0 %v635_v12 }
  0x5d   : > { %338 = vmatmul.bf16.vlgmr.msra.gmra.mxu0 %v634_v13 }
  0x9a   : > { %v401_v18 = vpop.permute.xlu2 %400 }
  0x9b   : > { %vm405_vm1 = vcmp.eq.s32.totalorder %v350_v17, %v401_v18 }
  0xa2   : > { %v404_v22 = vpop.permute.xlu2 %403 }
  0xa3   : > { %vm406_vm4 = vcmp.eq.s32.totalorder %v350_v17, %v404_v22 }
  0xda   : > { %v339_v19 = vpop.f32.mrf.mxu0 }
  0xdb   : > { %353 = vmax.xlane.f32.xlu0 %v339_v19  ;;  %v407_v20 = vsel %vm405_vm1, %v339_v19, 0.0 }
  0xdc   : > { %409 = vadd.xlane.f32.xlu2 %v407_v20 }
  0xe2   : > { %v341_v21 = vpop.f32.mrf.mxu0 }
  0xe3   : > { %355 = vmax.xlane.f32.xlu0 %v341_v21  ;;  %v408_v44 = vsel %vm406_vm4, %v341_v21, 0.0 }
 0x14e   : > { %v354_v25 = vpop.xlane.xlu0 %353 }
 0x14f   : > { %v357_v26 = vmax.f32 %v351_v23, %v354_v25  ;;  %v410_v27 = vpop.xlane.xlu2 %409 }
 0x150   : > { %v413_v28 = vadd.f32 %v410_v27, %v397_v24 }
 0x151   : > { %v378_v29 = vsub.f32 %v351_v23, %v357_v26  ;;  %417 = vst.msk [vmem:[#allocation2] sm:$0xff] %vm394_vm2, %v357_v26  ;;  %362 = vperm.xlu1 %755, %v357_v26  }
 0x152   : > { %415 = vst.msk [vmem:[#allocation4] sm:$0xff] %vm394_vm2, %v413_v28 }
 0x153   : > { %v380_v45 = vmul.f32 1.442695, %v378_v29 }
 0x156   : > { %v356_v31 = vpop.xlane.xlu0 %355 }
 0x157   : > { %v358_v32 = vmax.f32 %v352_v30, %v356_v31 }
 0x159   : > { %v379_v33 = vsub.f32 %v352_v30, %v358_v32  ;;  %418 = vst.msk [vmem:[#allocation2 + $0x8] sm:$0xff] %vm394_vm2, %v358_v32  ;;  %367 = vperm.xlu1 %755, %v358_v32  }
 0x15b   : > { %v382_v46 = vmul.f32 1.442695, %v379_v33 }
 0x1c3   : > { %v363_v34 = vpop.permute.xlu1 %362 }
 0x1c4   : > { %v370_v35 = vsub.f32 %v339_v19, %v363_v34 }
 0x1c6   : > { %v372_v36 = vmul.f32 1.442695, %v370_v35 }
 0x1c8   : > { %758 = vpow2.f32 %v372_v36 }
 0x1cb   : > { %v368_v37 = vpop.permute.xlu1 %367 }
 0x1cc   : > { %v371_v38 = vsub.f32 %v341_v21, %v368_v37 }
 0x1ce   : > { %v759_v39 = vpop.eup %758  ;;  %v374_v40 = vmul.f32 1.442695, %v371_v38 }
 0x1cf   : > { %v376_v41 = vsel %vm359_vm3, %v759_v39, 0.0 }
 0x1d0   : > { %760 = vpow2.f32 %v374_v40  ;;  %388 = vadd.xlane.f32.xlu0 %v376_v41 }
 0x1d1   : > { %762 = vpow2.f32 %v380_v45 }
 0x1d2   : > { %764 = vpow2.f32 %v382_v46 }
 0x1d6   : > { %v761_v42 = vpop.eup %760 }
 0x1d7   : > { %v377_v43 = vsel %vm359_vm3, %v761_v42, 0.0  ;;  %v763_v47 = vpop.eup %762 }
 0x1d8   : > { %390 = vadd.xlane.f32.xlu1 %v377_v43  ;;  %411 = vadd.xlane.f32.xlu0 %v408_v44  ;;  %v386_v49 = vmul.f32 %v763_v47, %v384_v48  ;;  %v765_v52 = vpop.eup %764 }
 0x1d9   : > { %v387_v55 = vmul.f32 %v765_v52, %v385_v53 }
 0x243   : > { %v389_v50 = vpop.xlane.xlu0 %388 }
 0x244   : > { %v392_v51 = vadd.f32 %v389_v50, %v386_v49 }
 0x246   : > { %395 = vst.msk [vmem:[#allocation3] sm:$0xff] %vm394_vm2, %v392_v51 }
 0x24b   : > { %v391_v56 = vpop.xlane.xlu1 %390  ;;  %v412_v57 = vpop.xlane.xlu0 %411  ;;  %422 = sbr.rel (%p628_p9) target bundleno = 731 (0x2db), region = 44 }
 0x24c   : > { %v393_v58 = vadd.f32 %v391_v56, %v387_v55  ;;  %v414_v59 = vadd.f32 %v412_v57, %v398_v54 }
 0x24e   : > { %396 = vst.msk [vmem:[#allocation3 + $0x8] sm:$0xff] %vm394_vm2, %v393_v58 }
 0x24f   : > { %416 = vst.msk [vmem:[#allocation4 + $0x8] sm:$0xff] %vm394_vm2, %v414_v59 }
 0x250   : > { %v427_v60 = vld [vmem:[#allocation3] sm:$0xff]  ;;  %v931_v61 = vmov 0   ;;  %v425_v0 = vld [vmem:[#allocation2] sm:$0xff]  ;;  %v426_v4 = vld [vmem:[#allocation2 + $0x8] sm:$0xff]  ;;  %vm423_vm5 = vcmp.ne.s32.totalorder %v1086_v5, 5554  ;;  %vm424_vm6 = vcmp.ne.s32.totalorder %v1090_v7, 5554 }
 0x251   : > { %766 = vset.pattern.permute.xlu0 %v931_v61  ;;  %767 = vlog2.f32 %v427_v60  ;;  %v435_v3 = vld [vmem:[#allocation4] sm:$0xff] }
 0x255   : > { %v428_v62 = vld [vmem:[#allocation3 + $0x8] sm:$0xff] }
 0x256   : > { %769 = vlog2.f32 %v428_v62  ;;  %v436_v11 = vld [vmem:[#allocation4 + $0x8] sm:$0xff] }
 0x257   : > { %v768_v63 = vpop.eup %767 }
 0x258   : > { %v430_v2 = vmul.f32 0.6931472, %v768_v63 }
 0x25a   : > { %v433_v8 = vadd.f32 %v430_v2, %v425_v0 }
 0x25c   : > { %v770_v1 = vpop.eup %769  ;;  %v437_v9 = vsub.f32 %v433_v8, %v435_v3 }
 0x25d   : > { %v432_v6 = vmul.f32 0.6931472, %v770_v1 }
 0x25e   : > { %v439_v12 = vsel %vm423_vm5, %v437_v9, 0.0 }
 0x25f   : > { %v434_v10 = vadd.f32 %v432_v6, %v426_v4  ;;  %443 = vperm.xlu0 %766, %v439_v12  }
 0x261   : > { %v438_v13 = vsub.f32 %v434_v10, %v436_v11 }
 0x263   : > { %v440_v14 = vsel %vm424_vm6, %v438_v13, 0.0 }
 0x267   : > { %448 = vperm.xlu0 %766, %v440_v14  }
 0x2d1   : > { %v444_v15 = vpop.permute.xlu0 %443 }
 0x2d2   : > { %451 = vst [vmem:[%s1081_s23] sm:$0xff] %v444_v15 }
 0x2d9   : > { %v449_v16 = vpop.permute.xlu0 %448 }
 0x2da   : > { %452 = vst [vmem:[%s1081_s23 + $0x8] sm:$0xff] %v449_v16 }
 0x2db PF: > { %s643_s18 = sshll.u32 %s911_s19, 4  ;;  %s466_s25 = sshll.u32 %s1081_s23, 4  ;;  %s467_s25 = int_to_ptr.vmem [resolvable:$true] %s466_s25 }
 0x2dc   : > { %s465_s21 = scalar_lea.hbm %s1168_s3, %s643_s18  ;;  %s454_s30 = scalar_lea.sflag [#allocation7], %s231_s29 }
 0x2dd   : > { %s468_s26 = sshll.u32 %s465_s21, 4  ;;  %s821_s19 = scalar_lea.hbm %s1168_s3, 48  ;;  %s469_s26 = int_to_ptr.hbm [resolvable:$true] %s468_s26 }
 0x2de   : > { %s815_s9 = sshra.s32 %s469_s26, 4  ;;  %s816_s9 = int_to_ptr.hbm [resolvable:$true] %s815_s9 }
 0x2df   : > { %s817_s28 = scalar_lea.hbm %s816_s9, 16  ;;  %p822_p0 = scmp.lt.s32.totalorder %s816_s9, %s1168_s3 }
 0x2e0   : > { %p818_p10 = scmp.ne.s32.totalorder %s816_s9, %s817_s28  ;;  %p823_p1 = scmp.lt.s32.totalorder %s821_s19, %s817_s28 }
 0x2e2   : > { %p819_p11 = pnand %p818_p10, %p1042_p12  ;;  %p824_p4 = por %p823_p1, %p822_p0 }
 0x2e4   : > { %p820_p13 = pneg %p819_p11 }
 0x2e6   : > { %p825_p5 = pnand %p824_p4, %p820_p13 }
 0x2e8   : > { %828 = shalt.err (!%p825_p5)
}
 0x2e9   : > { %s932_s29 = smov 128   ;;  %s933_s23 = smov 8  }
 0x2ea   : > { %646 = dma.vmem_to_hbm [thread:$0]  (%p1042_p12), %s467_s25, 256, %s469_s26, %s454_s30, %s932_s29, %s932_s29, %s933_s23  }
 0x2eb PF: > { %p657_p6 = scmp.ge.s32.totalorder %s923_s22, 2  ;;  %s483_s15 = sand.u32 1, %s883_s12  }
 0x2ec   : > { %s484_s18 = scalar_lea.sflag [#allocation7], %s483_s15 }
 0x2ed   : > { %p653_p7 = pnand %p657_p6, %p1050_p2 }
 0x2ef   : > { %p654_p3 = pneg %p653_p7 }
 0x2f1   : > { %878 = dma.done.wait (%p654_p3), %s484_s18, 256  }
 0x2f2   : > { %880 = vsyncadd (%p654_p3), %s484_s18, 4294967040  ;;  %s19_s22 = sadd.s32 1, %s923_s22   ;;  %s1180_s8 = sld [smem:[#allocation14_spill]] }
 0x2f3   : > { %p16_p8 = scmp.ge.s32.totalorder %s19_s22, 8   ;;  %s1181_s19 = sld [smem:[#allocation11_spill]] }
 0x2f4   : > { %s1182_s27 = sld [smem:[#allocation12_spill]]  ;;  %s1184_s12 = smov %s887_s13 }
 0x2f5   : > { %s1183_s21 = sld [smem:[#allocation13_spill]]  ;;  %s1185_s13 = smov %s891_s14 }
 0x2f6   : > { %s1186_s14 = smov %s1040_s7  ;;  %s1187_s15 = smov %s899_s16 }
 0x2f7   : > { %s1188_s16 = smov %s903_s17  ;;  %s1190_s18 = smov %s915_s20 }
 0x2f8   : > { %s1189_s17 = smov %s1180_s8  ;;  %18 = sbr.rel (!%p16_p8) target bundleno = 9 (0x9), region = 91 }
 0x2fa   : > { %s1191_s20 = smov %s1182_s27 }
 0x2fd   :  { %490 = vsyncpa [#allocation6], 1 }
 0x2fe   :  { %492 = vsyncpa [#allocation6 + $0x1], 1 }
 0x2ff   :  { %493 = vsyncpa [#allocation7], 1 }
 0x300   :  { %495 = vsyncpa [#allocation7 + $0x1], 1 }

</bundles_post_ra>
